<compile_context>
chip_gen: v5e
topology: v5e:2x2
jax: 0.10.0
libtpu: 0.0.40
codegen_flags: <defaults>
</compile_context>

<pallas_src>
import math

import jax
import jax.numpy as jnp
from jax.experimental import pallas as pl
from jax.experimental.pallas import tpu as pltpu


# ----------------------------------------------------------------------------
# Pallas kernel: fused (folded 1x1 conv) + bias + Hardswish, NCHW orientation
# ----------------------------------------------------------------------------
def _focus_kernel(x_ref, w_ref, b_ref, o_ref):
    # x_ref: (1, K, ts) f32   w_ref: (C2, K) f32   b_ref: (C2, 1) f32
    # o_ref: (1, C2, ts)
    x = x_ref[0]                                                      # (K, ts)
    y = jnp.dot(w_ref[...], x, preferred_element_type=jnp.float32)    # (C2, ts)
    y = y + b_ref[...]
    # Hardswish: x * hardtanh(x + 3, 0, 6) / 6
    y = y * jnp.clip(y + 3.0, 0.0, 6.0) * (1.0 / 6.0)
    o_ref[0] = y.astype(o_ref.dtype)


def _pick_spatial_tile(S, K, C2, itemsize):
    """Largest lane tile (multiple of 128) whose double-buffered in+out blocks
    stay under ~8 MiB of VMEM (safe on v5e/v6e/v7x)."""
    budget = 8 << 20
    cap = budget // (2 * itemsize * (K + C2))
    if S <= min(cap, 16384):
        return S                       # single block along S (full-dim block)
    ts = min(S, 16384, cap)
    return max(128, (ts // 128) * 128)


def fused_conv_bn_hswish_nchw(x_sd, w_fold, b_fold):
    """hardswish(w_fold @ x_sd[b] + b_fold) per batch.

    x_sd: (B, K, S) f32, w_fold: (C2, K), b_fold: (C2,). Returns (B, C2, S).
    """
    B, K, S = x_sd.shape
    C2 = w_fold.shape[0]
    ts = _pick_spatial_tile(S, K, C2, x_sd.dtype.itemsize)
    grid = (B, pl.cdiv(S, ts))

    x_c = x_sd.astype(jnp.float32)
    w_c = w_fold.astype(jnp.float32)
    b_c = b_fold.reshape(C2, 1).astype(jnp.float32)

    return pl.pallas_call(
        _focus_kernel,
        out_shape=jax.ShapeDtypeStruct((B, C2, S), x_sd.dtype),
        grid_spec=pltpu.PrefetchScalarGridSpec(
            num_scalar_prefetch=0,
            grid=grid,
            in_specs=[
                pl.BlockSpec((1, K, ts), lambda b, j: (b, 0, j)),
                pl.BlockSpec((C2, K), lambda b, j: (0, 0)),
                pl.BlockSpec((C2, 1), lambda b, j: (0, 0)),
            ],
            out_specs=pl.BlockSpec((1, C2, ts), lambda b, j: (b, 0, j)),
        ),
        compiler_params=pltpu.CompilerParams(
            dimension_semantics=("parallel", "parallel")),
    )(x_c, w_c, b_c)


# ----------------------------------------------------------------------------
# Full Focus forward (space-to-depth stays in NCHW; only free reshapes after)
# ----------------------------------------------------------------------------
def focus_forward(x, params, *, eps=1e-5):
    """x: (B, C1, H, W) NCHW (torch convention) -> (B, C2, H/2, W/2)."""
    B, C1, H, W = x.shape
    assert H % 2 == 0 and W % 2 == 0, "Focus needs even spatial dims"
    H2, W2 = H // 2, W // 2
    K = 4 * C1

    # space-to-depth, torch channel order cat([ee, oe, eo, oo], dim=1).
    # The 4 strided slices + concat fuse into one XLA pass; the trailing
    # reshape merging (H2, W2) -> S is free.
    x_sd = jnp.concatenate(
        [x[:, :, ::2, ::2], x[:, :, 1::2, ::2],
         x[:, :, ::2, 1::2], x[:, :, 1::2, 1::2]],
        axis=1)                                            # (B, K, H2, W2)
    x_sd = x_sd.reshape(B, K, H2 * W2)                     # (B, K, S), free

    # fold eval-mode BatchNorm into the (bias-free) 1x1 conv
    w = params["w_conv"]                                   # (C2, K) torch layout
    scale = params["bn_gamma"] / jnp.sqrt(params["bn_var"] + eps)    # (C2,)
    w_fold = w * scale[:, None]                            # (C2, K)
    b_fold = params["bn_beta"] - params["bn_mean"] * scale # (C2,)

    y = fused_conv_bn_hswish_nchw(x_sd, w_fold, b_fold)    # (B, C2, S)
    C2 = w.shape[0]
    return y.reshape(B, C2, H2, W2)                        # free, already NCHW


# ----------------------------------------------------------------------------
# Plain-JAX reference (for tolerance check) and deterministic param init
# ----------------------------------------------------------------------------
def focus_reference(x, params, *, eps=1e-5):
    x_sd = jnp.concatenate(
        [x[:, :, ::2, ::2], x[:, :, 1::2, ::2],
         x[:, :, ::2, 1::2], x[:, :, 1::2, 1::2]],
        axis=1)
    y = jnp.einsum("bkhw,ck->bchw", x_sd, params["w_conv"])
    scale = params["bn_gamma"] / jnp.sqrt(params["bn_var"] + eps)
    shift = params["bn_beta"] - params["bn_mean"] * scale
    y = y * scale[None, :, None, None] + shift[None, :, None, None]
    return y * jnp.clip(y + 3.0, 0.0, 6.0) / 6.0


def init_params(key, c1, c2, dtype=jnp.float32):
    K = 4 * c1
    k1, k2, k3, k4, k5 = jax.random.split(key, 5)
    bound = 1.0 / math.sqrt(K)
    return {
        # Conv2d(c1*4, c2, k=1, bias=False) weight, torch (out, in) layout
        "w_conv": jax.random.uniform(k1, (c2, K), dtype, -bound, bound),
        # BatchNorm2d(c2) eval-mode parameters / running stats
        "bn_gamma": jax.random.uniform(k2, (c2,), dtype, 0.5, 1.5),
        "bn_beta": jax.random.uniform(k3, (c2,), dtype, -0.1, 0.1),
        "bn_mean": jax.random.uniform(k4, (c2,), dtype, -0.1, 0.1),
        "bn_var": jax.random.uniform(k5, (c2,), dtype, 0.5, 1.5),
    }


if __name__ == "__main__":
    B, C1, H, W = 2, 4, 16, 16
    C2 = 32

    key = jax.random.PRNGKey(0)
    kx, kp = jax.random.split(key)
    x = jax.random.normal(kx, (B, C1, H, W), dtype=jnp.float32)
    params = init_params(kp, C1, C2)

    fwd = jax.jit(focus_forward)
    y = jax.block_until_ready(fwd(x, params))

    assert y.shape == (B, C2, H // 2, W // 2), y.shape
    assert bool(jnp.all(jnp.isfinite(y)))

    # numerical check vs. plain-JAX reference (all-f32 path -> tight tolerance)
    y_ref = focus_reference(x, params)
    max_err = float(jnp.max(jnp.abs(y - y_ref)))
    assert max_err < 1e-3, f"max abs err {max_err}"

    print("KERNEL_OK")
</pallas_src>

<mosaic_0001>
module attributes {stable_mosaic.version = 11 : i64} {
  func.func @_focus_kernel(%arg0: i32, %arg1: i32, %arg2: memref<1x16x64xf32, #tpu.memory_space<vmem>>, %arg3: memref<32x16xf32, #tpu.memory_space<vmem>>, %arg4: memref<32x1xf32, #tpu.memory_space<vmem>>, %arg5: memref<1x32x64xf32, #tpu.memory_space<vmem>>) attributes {dimension_semantics = [#tpu.dimension_semantics<parallel>, #tpu.dimension_semantics<parallel>], iteration_bounds = array<i64: 2, 1>, scalar_prefetch = 0 : i64, scratch_operands = 0 : i64, tpu.core_type = #tpu.core_type<tc>, window_params = [{transform_indices = @transform_0, window_bounds = array<i64: 1, 16, 64>}, {pipeline_mode = #tpu.pipeline_mode<synchronous>, transform_indices = @transform_1, window_bounds = array<i64: 32, 16>}, {pipeline_mode = #tpu.pipeline_mode<synchronous>, transform_indices = @transform_2, window_bounds = array<i64: 32, 1>}, {transform_indices = @transform_3, window_bounds = array<i64: 1, 32, 64>}]} {
    %c0 = arith.constant 0 : index
    %c0_0 = arith.constant 0 : index
    %c0_1 = arith.constant 0 : index
    %0 = vector.load %arg2[%c0, %c0_0, %c0_1] : memref<1x16x64xf32, #tpu.memory_space<vmem>>, vector<1x16x64xf32>
    %1 = vector.shape_cast %0 : vector<1x16x64xf32> to vector<16x64xf32>
    %c0_2 = arith.constant 0 : index
    %c0_3 = arith.constant 0 : index
    %2 = vector.load %arg3[%c0_2, %c0_3] : memref<32x16xf32, #tpu.memory_space<vmem>>, vector<32x16xf32>
    %cst = arith.constant dense<0.000000e+00> : vector<32x64xf32>
    %3 = tpu.matmul %2, %1, %cst {dimension_numbers = #tpu.dot_dimension_numbers<[1], [0], [0], [1], [0, 0, 1, 1], [], []>} : vector<32x16xf32>, vector<16x64xf32>, vector<32x64xf32> -> vector<32x64xf32>
    %c0_4 = arith.constant 0 : index
    %c0_5 = arith.constant 0 : index
    %4 = vector.load %arg4[%c0_4, %c0_5] : memref<32x1xf32, #tpu.memory_space<vmem>>, vector<32x1xf32>
    %5 = vector.broadcast %4 : vector<32x1xf32> to vector<32x64xf32>
    %6 = arith.addf %3, %5 : vector<32x64xf32>
    %cst_6 = arith.constant 3.000000e+00 : f32
    %7 = vector.broadcast %cst_6 : f32 to vector<32x64xf32>
    %8 = arith.addf %6, %7 : vector<32x64xf32>
    %cst_7 = arith.constant 0.000000e+00 : f32
    %cst_8 = arith.constant 6.000000e+00 : f32
    %9 = vector.broadcast %cst_7 : f32 to vector<32x64xf32>
    %10 = arith.maximumf %9, %8 : vector<32x64xf32>
    %11 = vector.broadcast %cst_8 : f32 to vector<32x64xf32>
    %12 = arith.minimumf %11, %10 : vector<32x64xf32>
    %13 = arith.mulf %6, %12 : vector<32x64xf32>
    %cst_9 = arith.constant 0.166666672 : f32
    %14 = vector.broadcast %cst_9 : f32 to vector<32x64xf32>
    %15 = arith.mulf %13, %14 : vector<32x64xf32>
    %c0_10 = arith.constant 0 : index
    %c0_11 = arith.constant 0 : index
    %c0_12 = arith.constant 0 : index
    %16 = vector.load %arg5[%c0_10, %c0_11, %c0_12] : memref<1x32x64xf32, #tpu.memory_space<vmem>>, vector<1x32x64xf32>
    %17 = vector.shape_cast %16 : vector<1x32x64xf32> to vector<32x64xf32>
    %18 = vector.shape_cast %15 : vector<32x64xf32> to vector<1x32x64xf32>
    tpu.vector_store %arg5[%c0_10, %c0_11, %c0_12], %18 {strides = array<i32>} : memref<1x32x64xf32, #tpu.memory_space<vmem>>, vector<1x32x64xf32>,
    return
  }
  func.func @transform_0(%arg0: i32, %arg1: i32) -> (i32, i32, i32) {
    %c0_i32 = arith.constant 0 : i32
    %c0_i32_0 = arith.constant 0 : i32
    return %arg0, %c0_i32, %arg1 : i32, i32, i32
  }
  func.func @transform_1(%arg0: i32, %arg1: i32) -> (i32, i32) {
    %c0_i32 = arith.constant 0 : i32
    %c0_i32_0 = arith.constant 0 : i32
    %c0_i32_1 = arith.constant 0 : i32
    return %c0_i32, %c0_i32_0 : i32, i32
  }
  func.func @transform_2(%arg0: i32, %arg1: i32) -> (i32, i32) {
    %c0_i32 = arith.constant 0 : i32
    %c0_i32_0 = arith.constant 0 : i32
    %c0_i32_1 = arith.constant 0 : i32
    return %c0_i32, %c0_i32_0 : i32, i32
  }
  func.func @transform_3(%arg0: i32, %arg1: i32) -> (i32, i32, i32) {
    %c0_i32 = arith.constant 0 : i32
    %c0_i32_0 = arith.constant 0 : i32
    return %arg0, %c0_i32, %arg1 : i32, i32, i32
  }
}

</mosaic_0001>

<bundles_post_ra>
// kernel: focus_forward.1
= control target key start
LH: loop header
LB: loop body
LE: loop exit
PB: predicated region body
PF: predicated region fallthrough
CT: control target
= control target key end

     0   :  { %s477_s12 = smov 0   ;;  %s479_s13 = smov 0   ;;  %s542_s0 = inlined_call_operand.vmem [shape: f32[2,16,64], index: 0, kind: input, shape index: {}]   ;;  %s543_s1 = inlined_call_operand.vmem [shape: f32[32,16], index: 1, kind: input, shape index: {}]   ;;  %s544_s2 = inlined_call_operand.vmem [shape: f32[32,1], index: 2, kind: input, shape index: {}]   ;;  %s545_s3 = inlined_call_operand.vmem [shape: f32[2,32,64], index: 3, kind: output, shape index: {}]  }
   0x1   :  { %s481_s14 = smov 0  }
   0x2 LB: > { %s25_s15 = sadd.s32 1, %s450_s13  ;;  %p386_p0 = scmp.ge.s32.totalorder %s454_s14, 1  ;;  %s454_s14 = sphi %s481_s14, %s13_s14   ;;  %s450_s13 = sphi %s479_s13, %s547_s13   ;;  %s446_s12 = sphi %s477_s12, %s546_s12  }
   0x3   : > { %p27_p1 = scmp.ge.s32.totalorder %s25_s15, 2  ;;  %p156_p2 = scmp.lt.s32.totalorder %s454_s14, 3 }
   0x5   : > { %s549_s15 = smov (%p27_p1, %s25_s15), 0  ;;  %p157_p3 = pnand %p386_p0, %p156_p2 }
   0x6   : > { %p186_p4 = scmp.lt.s32.totalorder (!%p157_p3), %s446_s12, 1 }
   0x7   : > { %160 = sbr.rel (%p157_p3) target bundleno = 167 (0xa7), region = 32 }
   0xc   : > { %v456_v0 = vmov 0   ;;  %v210_v1 = vld [vmem:[%s544_s2 + $0x10] sm:$0xff]  ;;  %v208_v2 = vld [vmem:[%s544_s2] sm:$0xff]  ;;  %s551_s12 = smov (!%p186_p4, %s446_s12), 1  ;;  %vm232_vm0 = vcmask 130048   ;;  %v205_v6 = vld [vmem:[%s543_s1 + $0x8] sm:$0xff] }
   0xd   : > { %431 = vset.pattern.permute.xlu1 %v456_v0  ;;  %430 = vset.pattern.permute.xlu0 %v456_v0  ;;  %s397_s20 = sshll.u32 %s551_s12, 4  ;;  %v204_v5 = vld [vmem:[%s543_s1] sm:$0xff]  ;;  %v206_v7 = vld [vmem:[%s543_s1 + $0x10] sm:$0xff]  ;;  %v207_v8 = vld [vmem:[%s543_s1 + $0x18] sm:$0xff]  ;;  %s398_s9 = sshll.u32 %s551_s12, 5  ;;  %vm294_vm1 = vcmask 523264  }
   0xe   : > { %224 = vperm.xlu1 %431, %v210_v1   ;;  %214 = vperm.xlu0 %430, %v208_v2   ;;  %s193_s23 = scalar_lea.vmem %s542_s0, %s397_s20  ;;  %v211_v9 = vld [vmem:[%s544_s2 + $0x18] sm:$0xff]  ;;  %v209_v10 = vld [vmem:[%s544_s2 + $0x8] sm:$0xff]  ;;  %s201_s16 = scalar_lea.vmem %s545_s3, %s398_s9 }
   0xf   : > { %v203_v3 = vld [vmem:[%s193_s23 + $0x8] sm:$0xff]  ;;  %v202_v4 = vld [vmem:[%s193_s23] sm:$0xff] }
  0x10   : > { %259 = vmatpush.msra.mxu0 %v203_v3  ;;  %399 = vmatpush.msra.mxu1 %v203_v3 }
  0x11   : > { %400 = vmatpush.msra.mxu2 %v203_v3  ;;  %401 = vmatpush.msra.mxu3 %v203_v3 }
  0x12   : > { %260 = vmatpush.msra.mxu0 %v202_v4  ;;  %402 = vmatpush.msra.mxu1 %v202_v4 }
  0x13   : > { %403 = vmatpush.msra.mxu2 %v202_v4  ;;  %404 = vmatpush.msra.mxu3 %v202_v4 }
  0x14   : > { %391 = vmatmul.msk.f32.vlgmr.msra.gmra.mxu0 %vm232_vm0, %v204_v5  ;;  %392 = vmatmul.msk.f32.vlgmr.msra.gmra.mxu1 %vm232_vm0, %v205_v6 }
  0x15   : > { %393 = vmatmul.msk.f32.vlgmr.msra.gmra.mxu2 %vm232_vm0, %v206_v7  ;;  %394 = vmatmul.msk.f32.vlgmr.msra.gmra.mxu3 %vm232_vm0, %v207_v8 }
  0x16   : > { %229 = vperm.xlu1 %431, %v211_v9   ;;  %219 = vperm.xlu0 %430, %v209_v10  }
  0x80   : > { %v215_v11 = vpop.permute.xlu0 %214  ;;  %v225_v12 = vpop.permute.xlu1 %224 }
  0x88   : > { %v220_v13 = vpop.permute.xlu0 %219  ;;  %v230_v22 = vpop.permute.xlu1 %229 }
  0x91   : > { %v262_v14 = vpop.f32.mrf.mxu0  ;;  %v265_v15 = vpop.f32.mrf.mxu1 }
  0x92   : > { %v263_v16 = vadd.f32 %v262_v14, %v215_v11  ;;  %v266_v17 = vadd.f32 %v265_v15, %v220_v13 }
  0x94   : > { %v274_v18 = vadd.f32 3.0, %v263_v16  ;;  %v275_v19 = vadd.f32 3.0, %v266_v17 }
  0x96   : > { %v278_v20 = vmax.f32 %v274_v18, 0.0  ;;  %v279_v21 = vmax.f32 %v275_v19, 0.0 }
  0x98   : > { %v282_v23 = vmin.f32 %v278_v20, 6.0  ;;  %v283_v24 = vmin.f32 %v279_v21, 6.0  ;;  %v268_v25 = vpop.f32.mrf.mxu2  ;;  %v271_v26 = vpop.f32.mrf.mxu3 }
  0x99   : > { %v269_v27 = vadd.f32 %v268_v25, %v225_v12  ;;  %v272_v28 = vadd.f32 %v271_v26, %v230_v22 }
  0x9a   : > { %v286_v29 = vmul.f32 %v282_v23, %v263_v16  ;;  %v287_v30 = vmul.f32 %v283_v24, %v266_v17 }
  0x9b   : > { %v276_v31 = vadd.f32 3.0, %v269_v27  ;;  %v277_v32 = vadd.f32 3.0, %v272_v28 }
  0x9c   : > { %v290_v33 = vmul.f32 0.16666667, %v286_v29  ;;  %v291_v34 = vmul.f32 0.16666667, %v287_v30 }
  0x9d   : > { %v280_v35 = vmax.f32 %v276_v31, 0.0  ;;  %v281_v36 = vmax.f32 %v277_v32, 0.0 }
  0x9e   : > { %295 = vst.msk [vmem:[%s201_s16] sm:$0xff] %vm294_vm1, %v290_v33 }
  0x9f   : > { %296 = vst.msk [vmem:[%s201_s16 + $0x8] sm:$0xff] %vm294_vm1, %v291_v34  ;;  %v284_v37 = vmin.f32 %v280_v35, 6.0  ;;  %v285_v38 = vmin.f32 %v281_v36, 6.0 }
  0xa1   : > { %v288_v39 = vmul.f32 %v284_v37, %v269_v27  ;;  %v289_v40 = vmul.f32 %v285_v38, %v272_v28 }
  0xa3   : > { %v292_v41 = vmul.f32 0.16666667, %v288_v39  ;;  %v293_v42 = vmul.f32 0.16666667, %v289_v40 }
  0xa5   : > { %297 = vst.msk [vmem:[%s201_s16 + $0x10] sm:$0xff] %vm294_vm1, %v292_v41 }
  0xa6   : > { %298 = vst.msk [vmem:[%s201_s16 + $0x18] sm:$0xff] %vm294_vm1, %v293_v42 }
  0xa7 PF: > { %s13_s14 = sadd.s32 1, %s454_s14   ;;  %s546_s12 = smov %s450_s13 }
  0xa8   : > { %p10_p5 = scmp.ge.s32.totalorder %s13_s14, 4   ;;  %s547_s13 = smov %s549_s15 }
  0xaa   :  { %12 = sbr.rel (!%p10_p5) target bundleno = 2 (0x2), region = 62 }

</bundles_post_ra>
